<compile_context>
chip_gen: v7x
topology: tpu7x:2x2x1
jax: 0.10.0
libtpu: 0.0.40
codegen_flags: <defaults>
</compile_context>

<pallas_src>
import functools

import jax
import jax.numpy as jnp
from jax.experimental import pallas as pl
from jax.experimental.pallas import tpu as pltpu


def _round_up(x, m):
    return (x + m - 1) // m * m


def _pick_tile(n_pad, target):
    """Largest power-of-two multiple of 128 that divides n_pad and is <= target."""
    t = 128
    while t * 2 <= target and n_pad % (t * 2) == 0:
        t *= 2
    return t


# ---------------------------------------------------------------------------
# Fully fused small-graph kernel: all layers in one pallas_call, A/H in VMEM.
# ---------------------------------------------------------------------------
def _fused_kernel(*refs, n_layers, layer_dims):
    """refs = (a, h0, w_0, b_0, ..., w_{L-1}, b_{L-1}, out)."""
    a_ref = refs[0]
    h_ref = refs[1]
    out_ref = refs[2 + 2 * n_layers]

    a = a_ref[...]          # (n_pad, n_pad) bf16, resident for all layers
    h = h_ref[...]          # (n_pad, fp0)   bf16

    for l in range(n_layers):
        fp_in, _ = layer_dims[l]
        w_ref = refs[2 + 2 * l]
        b_ref = refs[3 + 2 * l]

        # Mean aggregation over in-neighbors (MXU, f32 accumulation).
        h_neigh = jnp.dot(a, h, preferred_element_type=jnp.float32)

        # Self + neighbor projections via static slices of the stacked weights.
        out = jnp.dot(h, w_ref[0:fp_in, :], preferred_element_type=jnp.float32)
        out = out + jnp.dot(h_neigh, w_ref[fp_in:2 * fp_in, :].astype(jnp.float32),
                            preferred_element_type=jnp.float32)
        out = out + b_ref[...]

        if l != n_layers - 1:
            out = jnp.maximum(out, 0.0)     # ReLU between layers
            h = out.astype(jnp.bfloat16)    # dropout (eval) == identity
        else:
            out_ref[...] = out.astype(out_ref.dtype)


def _fused_forward(a_p, h0, packed_params, layer_dims):
    n_pad = a_p.shape[0]
    n_layers = len(packed_params)
    fp_out_last = layer_dims[-1][1]

    operands = [a_p, h0]
    in_specs = [
        pl.BlockSpec((n_pad, n_pad), lambda i: (0, 0)),
        pl.BlockSpec(h0.shape, lambda i: (0, 0)),
    ]
    for (w_stk, b_p) in packed_params:
        operands += [w_stk, b_p]
        in_specs += [pl.BlockSpec(w_stk.shape, lambda i: (0, 0)),
                     pl.BlockSpec(b_p.shape, lambda i: (0, 0))]

    kernel = functools.partial(_fused_kernel, n_layers=n_layers,
                               layer_dims=tuple(layer_dims))

    return pl.pallas_call(
        kernel,
        out_shape=jax.ShapeDtypeStruct((n_pad, fp_out_last), jnp.float32),
        grid_spec=pltpu.PrefetchScalarGridSpec(
            num_scalar_prefetch=0,
            grid=(1,),
            in_specs=in_specs,
            out_specs=pl.BlockSpec((n_pad, fp_out_last), lambda i: (0, 0)),
        ),
        compiler_params=pltpu.CompilerParams(
            dimension_semantics=("arbitrary",),
            vmem_limit_bytes=32 * 1024 * 1024,
        ),
    )(*operands)


# ---------------------------------------------------------------------------
# Tiled per-layer kernel (large-graph path): K-tiled A @ H with f32 accumulator.
# ---------------------------------------------------------------------------
def _sage_conv_kernel(a_ref, hk_ref, hself_ref, w_ref, b_ref, out_ref, acc_ref,
                      *, fp_in, apply_relu):
    """Node-tile i x contraction-tile k.

    a_ref    : (tm, tk)          bf16 block of row-normalized adjacency
    hk_ref   : (tk, fp_in)       bf16 block of H (aggregation operand)
    hself_ref: (tm, fp_in)       bf16 self rows of H (resident across k)
    w_ref    : (2*fp_in, fp_out) bf16 stacked [W_self ; W_neigh]
    b_ref    : (1, fp_out)       f32 bias
    out_ref  : (tm, fp_out)
    acc_ref  : (tm, fp_in)       f32 scratch accumulator for A @ H
    """
    k = pl.program_id(1)

    @pl.when(k == 0)
    def _init():
        acc_ref[...] = jnp.zeros_like(acc_ref)

    # Partial mean aggregation over this contraction tile (MXU, f32 accumulate).
    acc_ref[...] += jnp.dot(a_ref[...], hk_ref[...],
                            preferred_element_type=jnp.float32)

    @pl.when(k == pl.num_programs(1) - 1)
    def _finalize():
        # Two dots on static slices of the stacked weights (no concat buffer);
        # the f32 accumulator is used directly (no bf16 downcast).
        out = jnp.dot(hself_ref[...], w_ref[0:fp_in, :],
                      preferred_element_type=jnp.float32)
        out = out + jnp.dot(acc_ref[...],
                            w_ref[fp_in:2 * fp_in, :].astype(jnp.float32),
                            preferred_element_type=jnp.float32)
        out = out + b_ref[...]
        if apply_relu:
            out = jnp.maximum(out, 0.0)
        out_ref[...] = out.astype(out_ref.dtype)


def sage_conv_pallas(a_p, h, w_stacked, b, *, fp_in, apply_relu, out_dtype,
                     tm_target=1024, tk_target=1024):
    """One SAGEConv layer on padded, lane-dense operands."""
    n_pad, fp_in_h = h.shape
    assert fp_in_h == fp_in
    fp_out = w_stacked.shape[1]
    assert a_p.shape == (n_pad, n_pad)
    assert w_stacked.shape[0] == 2 * fp_in

    tm = _pick_tile(n_pad, tm_target)
    # Keep >= 2 node tiles so the "parallel" axis can split across v7x's 2 TCs.
    while n_pad // tm < 2 and tm > 128:
        tm //= 2
    tk = _pick_tile(n_pad, tk_target)

    kernel = functools.partial(_sage_conv_kernel, fp_in=fp_in,
                               apply_relu=apply_relu)

    return pl.pallas_call(
        kernel,
        out_shape=jax.ShapeDtypeStruct((n_pad, fp_out), out_dtype),
        grid_spec=pltpu.PrefetchScalarGridSpec(
            num_scalar_prefetch=0,
            grid=(n_pad // tm, n_pad // tk),          # reduction axis last
            in_specs=[
                pl.BlockSpec((tm, tk), lambda i, k: (i, k)),        # A block
                pl.BlockSpec((tk, fp_in), lambda i, k: (k, 0)),     # H (agg operand)
                pl.BlockSpec((tm, fp_in), lambda i, k: (i, 0)),     # H self rows
                pl.BlockSpec((2 * fp_in, fp_out), lambda i, k: (0, 0)),  # weights
                pl.BlockSpec((1, fp_out), lambda i, k: (0, 0)),     # bias
            ],
            out_specs=pl.BlockSpec((tm, fp_out), lambda i, k: (i, 0)),
            scratch_shapes=[pltpu.VMEM((tm, fp_in), jnp.float32)],
        ),
        compiler_params=pltpu.CompilerParams(
            dimension_semantics=("parallel", "arbitrary"),
            vmem_limit_bytes=32 * 1024 * 1024,   # fits v5e/v6e/v7x scoped VMEM
        ),
    )(a_p, h, h, w_stacked, b)


# ---------------------------------------------------------------------------
# Hoisted (once-per-graph / once-per-params) preparation + jitted forward.
# ---------------------------------------------------------------------------
def prepare_graph(a_norm):
    """Pad the row-normalized adjacency to a 128 multiple and cast to bf16."""
    n = a_norm.shape[0]
    n_pad = _round_up(n, 128)
    return jnp.pad(a_norm.astype(jnp.bfloat16),
                   ((0, n_pad - n), (0, n_pad - n)))


def prepare_params(params):
    """Pad, cast and stack layer weights once, outside the jitted forward."""
    packed = []
    for (w_self, w_neigh, bias) in params:
        f_in, f_out = w_self.shape
        fp_in = _round_up(f_in, 128)
        fp_out = _round_up(f_out, 128)
        w_self_p = jnp.pad(w_self.astype(jnp.bfloat16),
                           ((0, fp_in - f_in), (0, fp_out - f_out)))
        w_neigh_p = jnp.pad(w_neigh.astype(jnp.bfloat16),
                            ((0, fp_in - f_in), (0, fp_out - f_out)))
        w_stk = jnp.concatenate([w_self_p, w_neigh_p], axis=0)
        b_p = jnp.pad(bias.reshape(1, -1).astype(jnp.float32),
                      ((0, 0), (0, fp_out - f_out)))
        packed.append((w_stk, b_p))
    return tuple(packed)


def graphsage_forward(a_p, x, packed_params, *, out_feats,
                      tm_target=1024, tk_target=1024, force_tiled=False,
                      fused_vmem_budget=12 * 1024 * 1024):
    """Full GraphSAGE forward.  a_p = prepare_graph(A_norm),
    packed_params = prepare_params(params).  Dropout is eval-mode identity."""
    n, f_in0 = x.shape
    n_pad = a_p.shape[0]
    assert n_pad == _round_up(n, 128)

    fp0 = _round_up(f_in0, 128)
    h = jnp.pad(x.astype(jnp.bfloat16), ((0, n_pad - n), (0, fp0 - f_in0)))

    n_layers = len(packed_params)
    layer_dims = [(w.shape[0] // 2, w.shape[1]) for (w, _) in packed_params]
    max_fp = max([fp0] + [d for dims in layer_dims for d in dims])

    # Rough VMEM estimate for the fully fused path: A (bf16, double-buffered) +
    # a handful of live (n_pad, max_fp) f32 intermediates + weights.
    fused_bytes = (4 * n_pad * n_pad
                   + 6 * n_pad * max_fp * 4
                   + 2 * sum(w.size * 2 for (w, _) in packed_params))

    if (not force_tiled) and fused_bytes <= fused_vmem_budget:
        out = _fused_forward(a_p, h, packed_params, layer_dims)
    else:
        for l, (w_stk, b_p) in enumerate(packed_params):
            is_last = (l == n_layers - 1)
            h = sage_conv_pallas(
                a_p, h, w_stk, b_p,
                fp_in=layer_dims[l][0],
                apply_relu=not is_last,
                out_dtype=jnp.float32 if is_last else jnp.bfloat16,
                tm_target=tm_target, tk_target=tk_target)
            # inter-layer dropout in eval mode == identity
        out = h

    return out[:n, :out_feats]


# ---------------------------------------------------------------------------
# Reference + parameter init + test harness.
# ---------------------------------------------------------------------------
def _reference_forward(a_norm, x, params):
    """Pure-JAX f32 reference with identical semantics."""
    h = x
    n_layers = len(params)
    for l, (w_self, w_neigh, b) in enumerate(params):
        h_neigh = a_norm @ h
        h = h @ w_self + h_neigh @ w_neigh + b.reshape(1, -1)
        if l != n_layers - 1:
            h = jnp.maximum(h, 0.0)
    return h


def init_params(key, in_feats, n_hidden, n_classes, n_layers):
    dims = [in_feats] + [n_hidden] * (n_layers - 1) + [n_classes]
    params = []
    for l in range(n_layers):
        f_in, f_out = dims[l], dims[l + 1]
        key, k1, k2 = jax.random.split(key, 3)
        scale = 1.0 / jnp.sqrt(jnp.float32(f_in))
        w_self = jax.random.uniform(k1, (f_in, f_out), jnp.float32, -scale, scale)
        w_neigh = jax.random.uniform(k2, (f_in, f_out), jnp.float32, -scale, scale)
        b = jnp.zeros((f_out,), jnp.float32)
        params.append((w_self, w_neigh, b))
    return params


if __name__ == "__main__":
    # Small, deterministic problem consistent with GraphSAGE(in_feats, n_hidden,
    # n_classes, n_layers, F.relu, dropout, "mean").
    N = 128
    in_feats = 16
    n_hidden = 32
    n_classes = 8
    n_layers = 3

    key = jax.random.PRNGKey(0)
    k_adj, k_x, k_par, k_adj2, k_x2 = jax.random.split(key, 5)

    def make_graph(k, n):
        adj = (jax.random.uniform(k, (n, n)) < 0.1).astype(jnp.float32)
        adj = jnp.maximum(adj, jnp.eye(n, dtype=jnp.float32))   # self loops
        deg = jnp.sum(adj, axis=1, keepdims=True)
        return adj / deg                                        # row-stochastic

    a_norm = make_graph(k_adj, N)
    x = jax.random.normal(k_x, (N, in_feats), jnp.float32)
    params = init_params(k_par, in_feats, n_hidden, n_classes, n_layers)

    # Hoisted prep: run once per graph / parameter set, outside the jitted fwd.
    a_p = prepare_graph(a_norm)
    packed = prepare_params(params)

    # --- Fused small-graph path (single pallas_call, A & H resident in VMEM) ---
    fwd = jax.jit(functools.partial(graphsage_forward, out_feats=n_classes))
    out = jax.block_until_ready(fwd(a_p, x, packed))
    assert out.shape == (N, n_classes)
    ref = _reference_forward(a_norm, x, params)
    assert jnp.allclose(out, ref, atol=1e-1, rtol=1e-1), (
        float(jnp.max(jnp.abs(out - ref))))

    # --- Tiled large-graph path (exercised with a multi-tile grid) ---
    N2 = 256
    a_norm2 = make_graph(k_adj2, N2)
    x2 = jax.random.normal(k_x2, (N2, in_feats), jnp.float32)
    a_p2 = prepare_graph(a_norm2)
    fwd_tiled = jax.jit(functools.partial(
        graphsage_forward, out_feats=n_classes, force_tiled=True,
        tm_target=128, tk_target=128))
    out2 = jax.block_until_ready(fwd_tiled(a_p2, x2, packed))
    ref2 = _reference_forward(a_norm2, x2, params)
    assert out2.shape == (N2, n_classes)
    assert jnp.allclose(out2, ref2, atol=1e-1, rtol=1e-1), (
        float(jnp.max(jnp.abs(out2 - ref2))))

    print("KERNEL_OK")
</pallas_src>

<mosaic_0001>
module attributes {stable_mosaic.version = 11 : i64} {
  func.func @_fused_kernel(%arg0: i32, %arg1: memref<128x128xbf16, #tpu.memory_space<vmem>>, %arg2: memref<128x128xbf16, #tpu.memory_space<vmem>>, %arg3: memref<256x128xbf16, #tpu.memory_space<vmem>>, %arg4: memref<1x128xf32, #tpu.memory_space<vmem>>, %arg5: memref<256x128xbf16, #tpu.memory_space<vmem>>, %arg6: memref<1x128xf32, #tpu.memory_space<vmem>>, %arg7: memref<256x128xbf16, #tpu.memory_space<vmem>>, %arg8: memref<1x128xf32, #tpu.memory_space<vmem>>, %arg9: memref<128x128xf32, #tpu.memory_space<vmem>>) attributes {dimension_semantics = [#tpu.dimension_semantics<arbitrary>], iteration_bounds = array<i64: 1>, scalar_prefetch = 0 : i64, scratch_operands = 0 : i64, tpu.core_type = #tpu.core_type<tc>, window_params = [{pipeline_mode = #tpu.pipeline_mode<synchronous>, transform_indices = @transform_0, window_bounds = array<i64: 128, 128>}, {pipeline_mode = #tpu.pipeline_mode<synchronous>, transform_indices = @transform_1, window_bounds = array<i64: 128, 128>}, {pipeline_mode = #tpu.pipeline_mode<synchronous>, transform_indices = @transform_2, window_bounds = array<i64: 256, 128>}, {pipeline_mode = #tpu.pipeline_mode<synchronous>, transform_indices = @transform_3, window_bounds = array<i64: 1, 128>}, {pipeline_mode = #tpu.pipeline_mode<synchronous>, transform_indices = @transform_4, window_bounds = array<i64: 256, 128>}, {pipeline_mode = #tpu.pipeline_mode<synchronous>, transform_indices = @transform_5, window_bounds = array<i64: 1, 128>}, {pipeline_mode = #tpu.pipeline_mode<synchronous>, transform_indices = @transform_6, window_bounds = array<i64: 256, 128>}, {pipeline_mode = #tpu.pipeline_mode<synchronous>, transform_indices = @transform_7, window_bounds = array<i64: 1, 128>}, {pipeline_mode = #tpu.pipeline_mode<synchronous>, transform_indices = @transform_8, window_bounds = array<i64: 128, 128>}]} {
    %c0 = arith.constant 0 : index
    %c0_0 = arith.constant 0 : index
    %0 = vector.load %arg1[%c0, %c0_0] : memref<128x128xbf16, #tpu.memory_space<vmem>>, vector<128x128xbf16>
    %c0_1 = arith.constant 0 : index
    %c0_2 = arith.constant 0 : index
    %1 = vector.load %arg2[%c0_1, %c0_2] : memref<128x128xbf16, #tpu.memory_space<vmem>>, vector<128x128xbf16>
    %cst = arith.constant dense<0.000000e+00> : vector<128x128xf32>
    %2 = tpu.matmul %0, %1, %cst {dimension_numbers = #tpu.dot_dimension_numbers<[1], [0], [0], [1], [0, 0, 1, 1], [], []>} : vector<128x128xbf16>, vector<128x128xbf16>, vector<128x128xf32> -> vector<128x128xf32>
    %c0_3 = arith.constant 0 : index
    %c0_4 = arith.constant 0 : index
    %3 = vector.load %arg3[%c0_3, %c0_4] : memref<256x128xbf16, #tpu.memory_space<vmem>>, vector<128x128xbf16>
    %cst_5 = arith.constant dense<0.000000e+00> : vector<128x128xf32>
    %4 = tpu.matmul %1, %3, %cst_5 {dimension_numbers = #tpu.dot_dimension_numbers<[1], [0], [0], [1], [0, 0, 1, 1], [], []>} : vector<128x128xbf16>, vector<128x128xbf16>, vector<128x128xf32> -> vector<128x128xf32>
    %c128 = arith.constant 128 : index
    %c0_6 = arith.constant 0 : index
    %5 = vector.load %arg3[%c128, %c0_6] : memref<256x128xbf16, #tpu.memory_space<vmem>>, vector<128x128xbf16>
    %6 = arith.extf %5 : vector<128x128xbf16> to vector<128x128xf32>
    %cst_7 = arith.constant dense<0.000000e+00> : vector<128x128xf32>
    %7 = tpu.matmul %2, %6, %cst_7 {dimension_numbers = #tpu.dot_dimension_numbers<[1], [0], [0], [1], [0, 0, 1, 1], [], []>} : vector<128x128xf32>, vector<128x128xf32>, vector<128x128xf32> -> vector<128x128xf32>
    %8 = arith.addf %4, %7 : vector<128x128xf32>
    %c0_8 = arith.constant 0 : index
    %c0_9 = arith.constant 0 : index
    %9 = vector.load %arg4[%c0_8, %c0_9] : memref<1x128xf32, #tpu.memory_space<vmem>>, vector<1x128xf32>
    %10 = vector.broadcast %9 : vector<1x128xf32> to vector<128x128xf32>
    %11 = arith.addf %8, %10 : vector<128x128xf32>
    %cst_10 = arith.constant 0.000000e+00 : f32
    %12 = vector.broadcast %cst_10 : f32 to vector<128x128xf32>
    %13 = arith.maximumf %11, %12 : vector<128x128xf32>
    %14 = arith.truncf %13 : vector<128x128xf32> to vector<128x128xbf16>
    %cst_11 = arith.constant dense<0.000000e+00> : vector<128x128xf32>
    %15 = tpu.matmul %0, %14, %cst_11 {dimension_numbers = #tpu.dot_dimension_numbers<[1], [0], [0], [1], [0, 0, 1, 1], [], []>} : vector<128x128xbf16>, vector<128x128xbf16>, vector<128x128xf32> -> vector<128x128xf32>
    %c0_12 = arith.constant 0 : index
    %c0_13 = arith.constant 0 : index
    %16 = vector.load %arg5[%c0_12, %c0_13] : memref<256x128xbf16, #tpu.memory_space<vmem>>, vector<128x128xbf16>
    %cst_14 = arith.constant dense<0.000000e+00> : vector<128x128xf32>
    %17 = tpu.matmul %14, %16, %cst_14 {dimension_numbers = #tpu.dot_dimension_numbers<[1], [0], [0], [1], [0, 0, 1, 1], [], []>} : vector<128x128xbf16>, vector<128x128xbf16>, vector<128x128xf32> -> vector<128x128xf32>
    %c128_15 = arith.constant 128 : index
    %c0_16 = arith.constant 0 : index
    %18 = vector.load %arg5[%c128_15, %c0_16] : memref<256x128xbf16, #tpu.memory_space<vmem>>, vector<128x128xbf16>
    %19 = arith.extf %18 : vector<128x128xbf16> to vector<128x128xf32>
    %cst_17 = arith.constant dense<0.000000e+00> : vector<128x128xf32>
    %20 = tpu.matmul %15, %19, %cst_17 {dimension_numbers = #tpu.dot_dimension_numbers<[1], [0], [0], [1], [0, 0, 1, 1], [], []>} : vector<128x128xf32>, vector<128x128xf32>, vector<128x128xf32> -> vector<128x128xf32>
    %21 = arith.addf %17, %20 : vector<128x128xf32>
    %c0_18 = arith.constant 0 : index
    %c0_19 = arith.constant 0 : index
    %22 = vector.load %arg6[%c0_18, %c0_19] : memref<1x128xf32, #tpu.memory_space<vmem>>, vector<1x128xf32>
    %23 = vector.broadcast %22 : vector<1x128xf32> to vector<128x128xf32>
    %24 = arith.addf %21, %23 : vector<128x128xf32>
    %cst_20 = arith.constant 0.000000e+00 : f32
    %25 = vector.broadcast %cst_20 : f32 to vector<128x128xf32>
    %26 = arith.maximumf %24, %25 : vector<128x128xf32>
    %27 = arith.truncf %26 : vector<128x128xf32> to vector<128x128xbf16>
    %cst_21 = arith.constant dense<0.000000e+00> : vector<128x128xf32>
    %28 = tpu.matmul %0, %27, %cst_21 {dimension_numbers = #tpu.dot_dimension_numbers<[1], [0], [0], [1], [0, 0, 1, 1], [], []>} : vector<128x128xbf16>, vector<128x128xbf16>, vector<128x128xf32> -> vector<128x128xf32>
    %c0_22 = arith.constant 0 : index
    %c0_23 = arith.constant 0 : index
    %29 = vector.load %arg7[%c0_22, %c0_23] : memref<256x128xbf16, #tpu.memory_space<vmem>>, vector<128x128xbf16>
    %cst_24 = arith.constant dense<0.000000e+00> : vector<128x128xf32>
    %30 = tpu.matmul %27, %29, %cst_24 {dimension_numbers = #tpu.dot_dimension_numbers<[1], [0], [0], [1], [0, 0, 1, 1], [], []>} : vector<128x128xbf16>, vector<128x128xbf16>, vector<128x128xf32> -> vector<128x128xf32>
    %c128_25 = arith.constant 128 : index
    %c0_26 = arith.constant 0 : index
    %31 = vector.load %arg7[%c128_25, %c0_26] : memref<256x128xbf16, #tpu.memory_space<vmem>>, vector<128x128xbf16>
    %32 = arith.extf %31 : vector<128x128xbf16> to vector<128x128xf32>
    %cst_27 = arith.constant dense<0.000000e+00> : vector<128x128xf32>
    %33 = tpu.matmul %28, %32, %cst_27 {dimension_numbers = #tpu.dot_dimension_numbers<[1], [0], [0], [1], [0, 0, 1, 1], [], []>} : vector<128x128xf32>, vector<128x128xf32>, vector<128x128xf32> -> vector<128x128xf32>
    %34 = arith.addf %30, %33 : vector<128x128xf32>
    %c0_28 = arith.constant 0 : index
    %c0_29 = arith.constant 0 : index
    %35 = vector.load %arg8[%c0_28, %c0_29] : memref<1x128xf32, #tpu.memory_space<vmem>>, vector<1x128xf32>
    %36 = vector.broadcast %35 : vector<1x128xf32> to vector<128x128xf32>
    %37 = arith.addf %34, %36 : vector<128x128xf32>
    %c0_30 = arith.constant 0 : index
    %c0_31 = arith.constant 0 : index
    %38 = vector.load %arg9[%c0_30, %c0_31] : memref<128x128xf32, #tpu.memory_space<vmem>>, vector<128x128xf32>
    tpu.vector_store %arg9[%c0_30, %c0_31], %37 {strides = array<i32>} : memref<128x128xf32, #tpu.memory_space<vmem>>, vector<128x128xf32>,
    return
  }
  func.func @transform_0(%arg0: i32) -> (i32, i32) {
    %c0_i32 = arith.constant 0 : i32
    %c0_i32_0 = arith.constant 0 : i32
    %c0_i32_1 = arith.constant 0 : i32
    return %c0_i32, %c0_i32_0 : i32, i32
  }
  func.func @transform_1(%arg0: i32) -> (i32, i32) {
    %c0_i32 = arith.constant 0 : i32
    %c0_i32_0 = arith.constant 0 : i32
    %c0_i32_1 = arith.constant 0 : i32
    return %c0_i32, %c0_i32_0 : i32, i32
  }
  func.func @transform_2(%arg0: i32) -> (i32, i32) {
    %c0_i32 = arith.constant 0 : i32
    %c0_i32_0 = arith.constant 0 : i32
    %c0_i32_1 = arith.constant 0 : i32
    return %c0_i32, %c0_i32_0 : i32, i32
  }
  func.func @transform_3(%arg0: i32) -> (i32, i32) {
    %c0_i32 = arith.constant 0 : i32
    %c0_i32_0 = arith.constant 0 : i32
    %c0_i32_1 = arith.constant 0 : i32
    return %c0_i32, %c0_i32_0 : i32, i32
  }
  func.func @transform_4(%arg0: i32) -> (i32, i32) {
    %c0_i32 = arith.constant 0 : i32
    %c0_i32_0 = arith.constant 0 : i32
    %c0_i32_1 = arith.constant 0 : i32
    return %c0_i32, %c0_i32_0 : i32, i32
  }
  func.func @transform_5(%arg0: i32) -> (i32, i32) {
    %c0_i32 = arith.constant 0 : i32
    %c0_i32_0 = arith.constant 0 : i32
    %c0_i32_1 = arith.constant 0 : i32
    return %c0_i32, %c0_i32_0 : i32, i32
  }
  func.func @transform_6(%arg0: i32) -> (i32, i32) {
    %c0_i32 = arith.constant 0 : i32
    %c0_i32_0 = arith.constant 0 : i32
    %c0_i32_1 = arith.constant 0 : i32
    return %c0_i32, %c0_i32_0 : i32, i32
  }
  func.func @transform_7(%arg0: i32) -> (i32, i32) {
    %c0_i32 = arith.constant 0 : i32
    %c0_i32_0 = arith.constant 0 : i32
    %c0_i32_1 = arith.constant 0 : i32
    return %c0_i32, %c0_i32_0 : i32, i32
  }
  func.func @transform_8(%arg0: i32) -> (i32, i32) {
    %c0_i32 = arith.constant 0 : i32
    %c0_i32_0 = arith.constant 0 : i32
    %c0_i32_1 = arith.constant 0 : i32
    return %c0_i32, %c0_i32_0 : i32, i32
  }
}

</mosaic_0001>

<bundles_post_ra>
// kernel: graphsage_forward.1
= control target key start
LH: loop header
LB: loop body
LE: loop exit
PB: predicated region body
PF: predicated region fallthrough
CT: control target
= control target key end

     0   :  { %13 = vsyncpa [#allocation3], 0  ;;  %s3028_s0 = inlined_call_operand.vmem [shape: bf16[128,128], index: 0, kind: input, shape index: {}]   ;;  %s3029_s1 = inlined_call_operand.vmem [shape: bf16[128,128], index: 1, kind: input, shape index: {}]   ;;  %s3030_s2 = inlined_call_operand.vmem [shape: bf16[256,128], index: 2, kind: input, shape index: {}]   ;;  %s3031_s3 = inlined_call_operand.vmem [shape: f32[1,128], index: 3, kind: input, shape index: {}]   ;;  %s3032_s4 = inlined_call_operand.hbm [shape: bf16[256,128], index: 4, kind: input, shape index: {}]   ;;  %s3033_s5 = inlined_call_operand.vmem [shape: f32[1,128], index: 5, kind: input, shape index: {}]   ;;  %s3034_s6 = inlined_call_operand.hbm [shape: bf16[256,128], index: 6, kind: input, shape index: {}]   ;;  %s3035_s7 = inlined_call_operand.vmem [shape: f32[1,128], index: 7, kind: input, shape index: {}]   ;;  %s3036_s8 = inlined_call_operand.vmem [shape: f32[128,128], index: 8, kind: output, shape index: {}]  }
   0x1   :  { %14 = vsyncpa [#allocation5], 0  ;;  %s2549_s27 = smov [#allocation2]   ;;  %s2501_s9 = scalar_lea.hbm %s3032_s4, 2048 }
   0x2   :  { %s28_s28 = sshll.u32 %s2549_s27, 4  ;;  %p2502_p0 = scmp.ne.s32.totalorder %s3032_s4, %s2501_s9  ;;  %s29_s28 = int_to_ptr.vmem [resolvable:$true] %s28_s28 }
   0x3   :  { %p2505_p1 = scmp.lt.u32.totalorder %s2501_s9, %s3032_s4 }
   0x5   :  { %p2507_p2 = pnand %p2505_p1, %p2502_p0 }
   0x7   :  { %2510 = shalt.err (!%p2507_p2)
}
   0x8   :  { %s2511_s14 = scalar_lea.vmem %s29_s28, 2048  ;;  %p2516_p4 = scmp.lt.s32.totalorder %s29_s28, %s29_s28 }
   0x9   :  { %p2512_p3 = scmp.ne.s32.totalorder %s29_s28, %s2511_s14  ;;  %p2517_p5 = scmp.lt.s32.totalorder %s2511_s14, %s2511_s14 }
   0xb   :  { %p2518_p6 = por %p2517_p5, %p2516_p4 }
   0xd   :  { %p2519_p7 = pnand %p2518_p6, %p2512_p3 }
   0xf   :  { %2522 = shalt.err (!%p2519_p7)
}
  0x10   :  { %s2550_s15 = smov 64   ;;  %s2551_s16 = smov 4  }
  0x11   :  { %34 = dma.hbm_to_vmem [thread:$0]  %s3032_s4, 2048, %s29_s28, [#allocation3], %s2550_s15, %s2550_s15, %s2551_s16  }
  0x12   :  { %s2552_s19 = smov [#allocation4]   ;;  %s2523_s23 = scalar_lea.hbm %s3034_s6, 2048 }
  0x13   :  { %s42_s20 = sshll.u32 %s2552_s19, 4  ;;  %p2524_p8 = scmp.ne.s32.totalorder %s3034_s6, %s2523_s23  ;;  %s43_s20 = int_to_ptr.vmem [resolvable:$true] %s42_s20 }
  0x14   :  { %p2527_p9 = scmp.lt.u32.totalorder %s2523_s23, %s3034_s6 }
  0x16   :  { %p2529_p10 = pnand %p2527_p9, %p2524_p8 }
  0x18   :  { %2532 = shalt.err (!%p2529_p10)
}
  0x19   :  { %s2533_s29 = scalar_lea.vmem %s43_s20, 2048  ;;  %p2538_p12 = scmp.lt.s32.totalorder %s43_s20, %s43_s20 }
  0x1a   :  { %p2534_p11 = scmp.ne.s32.totalorder %s43_s20, %s2533_s29  ;;  %p2539_p13 = scmp.lt.s32.totalorder %s2533_s29, %s2533_s29 }
  0x1c   :  { %p2540_p0 = por %p2539_p13, %p2538_p12 }
  0x1e   :  { %p2541_p1 = pnand %p2540_p0, %p2534_p11 }
  0x20   :  { %2544 = shalt.err (!%p2541_p1)
}
  0x21   :  { %48 = dma.hbm_to_vmem [thread:$0]  %s3034_s6, 2048, %s43_s20, [#allocation5], %s2550_s15, %s2550_s15, %s2551_s16  }
  0x22   :  { %2545 = dma.done.wait [#allocation3], 2048  }
  0x23   :  { %2546 = vsyncadd [#allocation3], 4294965248 }
  0x24   :  { %2547 = dma.done.wait [#allocation5], 2048  }
  0x25   :  { %2548 = vsyncadd [#allocation5], 4294965248  ;;  %v2625_v0 = vld [vmem:[%s3029_s1] sm:$0xff]   ;;  %v2630_v1 = vld [vmem:[%s3029_s1 + $0x8] sm:$0xff]  }
  0x26   :  { %1985 = vmatprep.subr.bf16.mxu0 %v2625_v0  ;;  %v2638_v2 = vld [vmem:[%s3029_s1 + $0x10] sm:$0xff]   ;;  %v2644_v3 = vld [vmem:[%s3029_s1 + $0x18] sm:$0xff]   ;;  %v2650_v4 = vld [vmem:[%s3028_s0] sm:$0xff]  }
  0x27   :  { %1986 = vmatpush3.bf16.msra.mxu0 %v2625_v0  ;;  %2001 = vmatprep.mubr.bf16.mxu0 %v2650_v4  ;;  %v2658_v5 = vld [vmem:[%s3029_s1 + $0x20] sm:$0xff]   ;;  %v2665_v6 = vld [vmem:[%s3029_s1 + $0x28] sm:$0xff]   ;;  %v2678_v9 = vld [vmem:[%s3029_s1 + $0x30] sm:$0xff]  }
  0x28   :  { %1987 = vmatprep.subr.bf16.mxu0 %v2630_v1  ;;  %v1769_v7 = vld [vmem:[%s3030_s2 + $0x40] sm:$0xff]   ;;  %v1770_v8 = vld [vmem:[%s3030_s2 + $0x48] sm:$0xff]   ;;  %v1771_v10 = vld [vmem:[%s3030_s2 + $0x50] sm:$0xff]  }
  0x29   :  { %2346 = vmatprep.subr.bf16.mxu1 %v1769_v7  ;;  %v2688_v11 = vld [vmem:[%s3029_s1 + $0x38] sm:$0xff]   ;;  %v2477_v12 = vld [vmem:[%s3030_s2] sm:$0xff]   ;;  %v2701_v14 = vld [vmem:[%s3028_s0 + $0x8] sm:$0xff]  }
  0x2a   :  { %2348 = vmatpush3.bf16.msra.mxu1 %v1769_v7  ;;  %v1772_v13 = vld [vmem:[%s3030_s2 + $0x58] sm:$0xff]   ;;  %v1773_v15 = vld [vmem:[%s3030_s2 + $0x60] sm:$0xff]   ;;  %v2709_v16 = vld [vmem:[%s3028_s0 + $0x10] sm:$0xff]  }
  0x2b   :  { %1988 = vmatpush3.bf16.msra.mxu0 %v2630_v1  ;;  %2350 = vmatprep.subr.bf16.mxu1 %v1770_v8  ;;  %v2478_v17 = vld [vmem:[%s3030_s2 + $0x8] sm:$0xff]   ;;  %v2479_v19 = vld [vmem:[%s3030_s2 + $0x10] sm:$0xff]   ;;  %v2726_v20 = vld [vmem:[%s3028_s0 + $0x18] sm:$0xff]  }
  0x2c   :  { %1989 = vmatprep.subr.bf16.mxu0 %v2638_v2  ;;  %v1774_v18 = vld [vmem:[%s3030_s2 + $0x68] sm:$0xff]   ;;  %v1775_v21 = vld [vmem:[%s3030_s2 + $0x70] sm:$0xff]   ;;  %v2734_v22 = vld [vmem:[%s3028_s0 + $0x20] sm:$0xff]  }
  0x2d   :  { %v2480_v23 = vld [vmem:[%s3030_s2 + $0x18] sm:$0xff]   ;;  %v2481_v24 = vld [vmem:[%s3030_s2 + $0x20] sm:$0xff]   ;;  %v2747_v25 = vld [vmem:[%s3028_s0 + $0x28] sm:$0xff]  }
  0x2e   :  { %2352 = vmatpush3.bf16.msra.mxu1 %v1770_v8  ;;  %v2752_v26 = vld [vmem:[%s3028_s0 + $0x30] sm:$0xff]   ;;  %v2482_v27 = vld [vmem:[%s3030_s2 + $0x28] sm:$0xff]   ;;  %v2765_v29 = vld [vmem:[%s3028_s0 + $0x38] sm:$0xff]  }
  0x2f   :  { %1990 = vmatpush3.bf16.msra.mxu0 %v2638_v2  ;;  %2354 = vmatprep.subr.bf16.mxu1 %v1771_v10  ;;  %v2483_v28 = vld [vmem:[%s3030_s2 + $0x30] sm:$0xff]   ;;  %v2484_v30 = vld [vmem:[%s3030_s2 + $0x38] sm:$0xff]  }
  0x30   :  { %1991 = vmatprep.subr.bf16.mxu0 %v2644_v3  ;;  %v1776_v31 = vld [vmem:[%s3030_s2 + $0x78] sm:$0xff]   ;;  %v1783_v7 = vld [vmem:[#allocation2 + $0x70] sm:$0xff]  }
  0x32   :  { %2356 = vmatpush3.bf16.msra.mxu1 %v1771_v10 }
  0x33   :  { %1992 = vmatpush3.bf16.msra.mxu0 %v2644_v3  ;;  %2358 = vmatprep.subr.bf16.mxu1 %v1772_v13 }
  0x34   :  { %1993 = vmatprep.subr.bf16.mxu0 %v2658_v5 }
  0x36   :  { %2360 = vmatpush3.bf16.msra.mxu1 %v1772_v13 }
  0x37   :  { %1994 = vmatpush3.bf16.msra.mxu0 %v2658_v5  ;;  %2362 = vmatprep.subr.bf16.mxu1 %v1773_v15 }
  0x38   :  { %1995 = vmatprep.subr.bf16.mxu0 %v2665_v6 }
  0x3a   :  { %2364 = vmatpush3.bf16.msra.mxu1 %v1773_v15 }
  0x3b   :  { %1996 = vmatpush3.bf16.msra.mxu0 %v2665_v6  ;;  %2366 = vmatprep.subr.bf16.mxu1 %v1774_v18 }
  0x3c   :  { %1997 = vmatprep.subr.bf16.mxu0 %v2678_v9 }
  0x3e   :  { %2368 = vmatpush3.bf16.msra.mxu1 %v1774_v18 }
  0x3f   :  { %1998 = vmatpush3.bf16.msra.mxu0 %v2678_v9  ;;  %2370 = vmatprep.subr.bf16.mxu1 %v1775_v21 }
  0x40   :  { %1999 = vmatprep.subr.bf16.mxu0 %v2688_v11 }
  0x42   :  { %2372 = vmatpush3.bf16.msra.mxu1 %v1775_v21 }
  0x43   :  { %2000 = vmatpush3.bf16.msra.mxu0 %v2688_v11  ;;  %2374 = vmatprep.subr.bf16.mxu1 %v1776_v31 }
  0x44   :  { %2073 = vmatprep.subr.bf16.mxu0 %v2477_v12 }
  0x46   :  { %2002 = vmatmul.mubr.bf16.vlgmr.msra.gmra.mrb[0].mxu0 %v2701_v14  ;;  %2376 = vmatpush3.bf16.msra.mxu1 %v1776_v31 }
  0x47   :  { %2005 = vmatprep.mubr.bf16.mxu0 %v2709_v16  ;;  %2074 = vmatpush3.bf16.msra.mxu0 %v2477_v12 }
  0x48   :  { %2075 = vmatprep.subr.bf16.mxu0 %v2478_v17 }
  0x4b   :  { %2076 = vmatpush3.bf16.msra.mxu0 %v2478_v17 }
  0x4c   :  { %2077 = vmatprep.subr.bf16.mxu0 %v2479_v19 }
  0x4e   :  { %2006 = vmatmul.mubr.bf16.gmra.mrb[4].mxu0 %v2726_v20 }
  0x4f   :  { %2009 = vmatprep.mubr.bf16.mxu0 %v2734_v22  ;;  %2078 = vmatpush3.bf16.msra.mxu0 %v2479_v19 }
  0x50   :  { %2079 = vmatprep.subr.bf16.mxu0 %v2480_v23 }
  0x53   :  { %2080 = vmatpush3.bf16.msra.mxu0 %v2480_v23 }
  0x54   :  { %2081 = vmatprep.subr.bf16.mxu0 %v2481_v24 }
  0x56   :  { %2010 = vmatmul.mubr.bf16.gmra.mrb[8].mxu0 %v2747_v25 }
  0x57   :  { %2013 = vmatprep.mubr.bf16.mxu0 %v2752_v26  ;;  %2082 = vmatpush3.bf16.msra.mxu0 %v2481_v24 }
  0x58   :  { %2083 = vmatprep.subr.bf16.mxu0 %v2482_v27 }
  0x5b   :  { %2084 = vmatpush3.bf16.msra.mxu0 %v2482_v27 }
  0x5c   :  { %2085 = vmatprep.subr.bf16.mxu0 %v2483_v28 }
  0x5e   :  { %2014 = vmatmul.mubr.bf16.gmra.mrb[12].mxu0 %v2765_v29 }
  0x5f   :  { %2086 = vmatpush3.bf16.msra.mxu0 %v2483_v28  ;;  %2089 = vmatprep.mubr.bf16.mxu0 %v2625_v0  ;;  %v1777_v0 = vld [vmem:[#allocation2 + $0x40] sm:$0xff]  }
  0x60   :  { %2087 = vmatprep.subr.bf16.mxu0 %v2484_v30 }
  0x63   :  { %2088 = vmatpush3.bf16.msra.mxu0 %v2484_v30 }
  0x64   :  { %2378 = vmatprep.subr.bf16.mxu0 %v1777_v0 }
  0x66   :  { %2090 = vmatmul.mubr.bf16.vlgmr.msra.gmra.mrb[16].mxu0 %v2630_v1  ;;  %v1778_v1 = vld [vmem:[#allocation2 + $0x48] sm:$0xff]  }
  0x67   :  { %2093 = vmatprep.mubr.bf16.mxu0 %v2638_v2  ;;  %2380 = vmatpush3.bf16.msra.mxu0 %v1777_v0  ;;  %v1779_v2 = vld [vmem:[#allocation2 + $0x50] sm:$0xff]  }
  0x68   :  { %2382 = vmatprep.subr.bf16.mxu0 %v1778_v1 }
  0x6b   :  { %2384 = vmatpush3.bf16.msra.mxu0 %v1778_v1 }
  0x6c   :  { %2386 = vmatprep.subr.bf16.mxu0 %v1779_v2 }
  0x6e   :  { %2094 = vmatmul.mubr.bf16.gmra.mrb[20].mxu0 %v2644_v3  ;;  %v1780_v3 = vld [vmem:[#allocation2 + $0x58] sm:$0xff]  }
  0x6f   :  { %2097 = vmatprep.mubr.bf16.mxu0 %v2658_v5  ;;  %2388 = vmatpush3.bf16.msra.mxu0 %v1779_v2  ;;  %v1781_v5 = vld [vmem:[#allocation2 + $0x60] sm:$0xff]  }
  0x70   :  { %2390 = vmatprep.subr.bf16.mxu0 %v1780_v3 }
  0x73   :  { %2392 = vmatpush3.bf16.msra.mxu0 %v1780_v3 }
  0x74   :  { %2394 = vmatprep.subr.bf16.mxu0 %v1781_v5 }
  0x76   :  { %2098 = vmatmul.mubr.bf16.gmra.mrb[24].mxu0 %v2665_v6  ;;  %v1782_v6 = vld [vmem:[#allocation2 + $0x68] sm:$0xff]  }
  0x77   :  { %2101 = vmatprep.mubr.bf16.mxu0 %v2678_v9  ;;  %2396 = vmatpush3.bf16.msra.mxu0 %v1781_v5  ;;  %v2804_v9 = vld [vmem:[%s3031_s3] ss:$0 sm:$0xff] }
  0x78   :  { %2398 = vmatprep.subr.bf16.mxu0 %v1782_v6 }
  0x7b   :  { %2400 = vmatpush3.bf16.msra.mxu0 %v1782_v6 }
  0x7c   :  { %2402 = vmatprep.subr.bf16.mxu0 %v1783_v7 }
  0x7e   :  { %2102 = vmatmul.mubr.bf16.gmra.mrb[28].mxu0 %v2688_v11 }
  0x7f   :  { %2404 = vmatpush3.bf16.msra.mxu0 %v1783_v7 }
 0x119   :  { %v2003_v32 = vpop.f32.mrb[0].mxu0 }
 0x11a   :  { %v220_v33 = vpop.f32.mrb[1].mxu0 }
 0x11b   :  { %v2004_v34 = vpop.f32.mrb[2].mxu0  ;;  %2049 = vmatprep.mubr.f32.mxu1 %v220_v33 }
 0x11c   :  { %v223_v35 = vpop.f32.mrb[3].mxu0 }
 0x11d   :  { %2050 = vmatmul.mubr.f32.vlgmr.msra.gmra.mrb[0].mxu1 %v223_v35 }
 0x11e   :  { %2052 = vmatprep.mubr.f32.mxu1 %v2003_v32 }
 0x121   :  { %v2007_v36 = vpop.f32.mrb[4].mxu0  ;;  %2053 = vmatmul.mubr.f32.gmra.mrb[2].mxu1 %v2004_v34 }
 0x122   :  { %v236_v37 = vpop.f32.mrb[5].mxu0 }
 0x123   :  { %v2008_v38 = vpop.f32.mrb[6].mxu0  ;;  %2055 = vmatprep.mubr.f32.mxu1 %v236_v37 }
 0x124   :  { %v239_v39 = vpop.f32.mrb[7].mxu0 }
 0x125   :  { %2056 = vmatmul.mubr.f32.gmra.mrb[4].mxu1 %v239_v39 }
 0x126   :  { %2058 = vmatprep.mubr.f32.mxu1 %v2007_v36 }
 0x129   :  { %v2011_v40 = vpop.f32.mrb[8].mxu0  ;;  %2059 = vmatmul.mubr.f32.gmra.mrb[6].mxu1 %v2008_v38 }
 0x12a   :  { %v252_v41 = vpop.f32.mrb[9].mxu0 }
 0x12b   :  { %v2012_v42 = vpop.f32.mrb[10].mxu0  ;;  %2061 = vmatprep.mubr.f32.mxu1 %v252_v41 }
 0x12c   :  { %v255_v43 = vpop.f32.mrb[11].mxu0 }
 0x12d   :  { %2062 = vmatmul.mubr.f32.gmra.mrb[8].mxu1 %v255_v43 }
 0x12e   :  { %2064 = vmatprep.mubr.f32.mxu1 %v2011_v40 }
 0x131   :  { %v2015_v44 = vpop.f32.mrb[12].mxu0  ;;  %2065 = vmatmul.mubr.f32.gmra.mrb[10].mxu1 %v2012_v42 }
 0x132   :  { %v268_v45 = vpop.f32.mrb[13].mxu0 }
 0x133   :  { %v2016_v46 = vpop.f32.mrb[14].mxu0  ;;  %2067 = vmatprep.mubr.f32.mxu1 %v268_v45 }
 0x134   :  { %v271_v47 = vpop.f32.mrb[15].mxu0 }
 0x135   :  { %2068 = vmatmul.mubr.f32.gmra.mrb[12].mxu1 %v271_v47 }
 0x136   :  { %2070 = vmatprep.mubr.f32.mxu1 %v2015_v44 }
 0x139   :  { %2071 = vmatmul.mubr.f32.gmra.mrb[14].mxu1 %v2016_v46  ;;  %v2091_v48 = vpop.f32.mrb[16].mxu0 }
 0x13a   :  { %v558_v49 = vpop.f32.mrb[17].mxu0  ;;  %2121 = vmatprep.mubr.bf16.mxu1 %v2650_v4 }
 0x13b   :  { %v2092_v50 = vpop.f32.mrb[18].mxu0 }
 0x13c   :  { %v561_v51 = vpop.f32.mrb[19].mxu0 }
 0x141   :  { %v2783_v52 = vpop.f32.mrb[20].mxu0 }
 0x142   :  { %v574_v53 = vpop.f32.mrb[21].mxu0 }
 0x143   :  { %v2096_v54 = vpop.f32.mrb[22].mxu0 }
 0x144   :  { %v577_v55 = vpop.f32.mrb[23].mxu0 }
 0x149   :  { %v2785_v56 = vpop.f32.mrb[24].mxu0 }
 0x14a   :  { %v2787_v57 = vpop.f32.mrb[25].mxu0 }
 0x14b   :  { %v2789_v58 = vpop.f32.mrb[26].mxu0 }
 0x14c   :  { %v2791_v59 = vpop.f32.mrb[27].mxu0 }
 0x151   :  { %v2793_v60 = vpop.f32.mrb[28].mxu0 }
 0x152   :  { %v2795_v61 = vpop.f32.mrb[29].mxu0 }
 0x153   :  { %v2797_v62 = vpop.f32.mrb[30].mxu0 }
 0x154   :  { %v2799_v63 = vpop.f32.mrb[31].mxu0 }
 0x1f0   :  { %v2051_v8 = vpop.f32.mrb[0].mxu1 }
 0x1f1   :  { %v562_v10 = vadd.f32 %v2051_v8, %v561_v51  ;;  %v397_v11 = vpop.f32.mrb[1].mxu1 }
 0x1f2   :  { %v559_v12 = vadd.f32 %v558_v49, %v397_v11 }
 0x1f3   :  { %v629_v13 = vadd.f32 %v2804_v9, %v562_v10 }
 0x1f4   :  { %v628_v15 = vadd.f32 %v2804_v9, %v559_v12  ;;  %v2054_v17 = vpop.f32.mrb[2].mxu1 }
 0x1f5   :  { %v645_v18 = vmax.f32 %v629_v13, 0.0  ;;  %v570_v19 = vadd.f32 %v2092_v50, %v2054_v17  ;;  %v407_v21 = vpop.f32.mrb[3].mxu1 }
 0x1f6   :  { %v644_v23 = vmax.f32 %v628_v15, 0.0  ;;  %v567_v24 = vadd.f32 %v2091_v48, %v407_v21 }
 0x1f7   :  { %v631_v27 = vadd.f32 %v2804_v9, %v570_v19 }
 0x1f8   :  { %v630_v28 = vadd.f32 %v2804_v9, %v567_v24  ;;  %v2057_v30 = vpop.f32.mrb[4].mxu1  ;;  %v2810_v31 = vpack.c.bf16 %v645_v18, %v644_v23 }
 0x1f9   :  { %v647_v32 = vmax.f32 %v631_v27, 0.0  ;;  %v578_v33 = vadd.f32 %v2057_v30, %v577_v55  ;;  %v417_v34 = vpop.f32.mrb[5].mxu1 }
 0x1fa   :  { %v646_v35 = vmax.f32 %v630_v28, 0.0  ;;  %v575_v36 = vadd.f32 %v574_v53, %v417_v34  ;;  %2105 = vmatprep.subr.bf16.mxu1 %v2810_v31 }
 0x1fb   :  { %v633_v37 = vadd.f32 %v2804_v9, %v578_v33  ;;  %2106 = vmatpush3.bf16.msra.mxu1 %v2810_v31 }
 0x1fc   :  { %v632_v38 = vadd.f32 %v2804_v9, %v575_v36  ;;  %v2060_v39 = vpop.f32.mrb[6].mxu1  ;;  %v2816_v40 = vpack.c.bf16 %v647_v32, %v646_v35  ;;  %v2485_v36 = vld [vmem:[#allocation2] sm:$0xff]  }
 0x1fd   :  { %v649_v41 = vmax.f32 %v633_v37, 0.0  ;;  %v586_v42 = vadd.f32 %v2096_v54, %v2060_v39  ;;  %v427_v43 = vpop.f32.mrb[7].mxu1  ;;  %v2489_v37 = vld [vmem:[#allocation2 + $0x20] sm:$0xff]   ;;  %v2491_v39 = vld [vmem:[#allocation2 + $0x30] sm:$0xff]  }
 0x1fe   :  { %v648_v44 = vmax.f32 %v632_v38, 0.0  ;;  %v583_v45 = vadd.f32 %v2783_v52, %v427_v43  ;;  %2107 = vmatprep.subr.bf16.mxu1 %v2816_v40  ;;  %v2490_v38 = vld [vmem:[#allocation2 + $0x28] sm:$0xff]  }
 0x1ff   :  { %v635_v46 = vadd.f32 %v2804_v9, %v586_v42  ;;  %2108 = vmatpush3.bf16.msra.mxu1 %v2816_v40  ;;  %v1784_v42 = vld [vmem:[#allocation2 + $0x78] sm:$0xff]  }
 0x200   :  { %v634_v47 = vadd.f32 %v2804_v9, %v583_v45  ;;  %v2063_v48 = vpop.f32.mrb[8].mxu1  ;;  %v2823_v49 = vpack.c.bf16 %v649_v41, %v648_v44  ;;  %v2492_v41 = vld [vmem:[#allocation2 + $0x38] sm:$0xff]   ;;  %2406 = vmatprep.subr.bf16.mxu0 %v1784_v42 }
 0x201   :  { %v651_v50 = vmax.f32 %v635_v46, 0.0  ;;  %v594_v51 = vadd.f32 %v2063_v48, %v2791_v59  ;;  %v437_v53 = vpop.f32.mrb[9].mxu1  ;;  %2408 = vmatpush3.bf16.msra.mxu0 %v1784_v42 }
 0x202   :  { %v650_v54 = vmax.f32 %v634_v47, 0.0  ;;  %v591_v55 = vadd.f32 %v2787_v57, %v437_v53  ;;  %2109 = vmatprep.subr.bf16.mxu1 %v2823_v49 }
 0x203   :  { %v637_v52 = vadd.f32 %v2804_v9, %v594_v51  ;;  %2110 = vmatpush3.bf16.msra.mxu1 %v2823_v49 }
 0x204   :  { %v636_v0 = vadd.f32 %v2804_v9, %v591_v55  ;;  %v2066_v1 = vpop.f32.mrb[10].mxu1  ;;  %v2831_v2 = vpack.c.bf16 %v651_v50, %v650_v54 }
 0x205   :  { %v653_v3 = vmax.f32 %v637_v52, 0.0  ;;  %v602_v5 = vadd.f32 %v2789_v58, %v2066_v1  ;;  %v447_v6 = vpop.f32.mrb[11].mxu1 }
 0x206   :  { %v652_v59 = vmax.f32 %v636_v0, 0.0  ;;  %v599_v7 = vadd.f32 %v2785_v56, %v447_v6  ;;  %2111 = vmatprep.subr.bf16.mxu1 %v2831_v2 }
 0x207   :  { %v639_v57 = vadd.f32 %v2804_v9, %v602_v5  ;;  %2112 = vmatpush3.bf16.msra.mxu1 %v2831_v2 }
 0x208   :  { %v638_v8 = vadd.f32 %v2804_v9, %v599_v7  ;;  %v2069_v10 = vpop.f32.mrb[12].mxu1  ;;  %v2839_v11 = vpack.c.bf16 %v653_v3, %v652_v59 }
 0x209   :  { %v655_v12 = vmax.f32 %v639_v57, 0.0  ;;  %v610_v13 = vadd.f32 %v2069_v10, %v2799_v63  ;;  %v457_v15 = vpop.f32.mrb[13].mxu1 }
 0x20a   :  { %v654_v58 = vmax.f32 %v638_v8, 0.0  ;;  %v607_v17 = vadd.f32 %v2795_v61, %v457_v15  ;;  %2113 = vmatprep.subr.bf16.mxu1 %v2839_v11 }
 0x20b   :  { %v641_v56 = vadd.f32 %v2804_v9, %v610_v13  ;;  %2114 = vmatpush3.bf16.msra.mxu1 %v2839_v11 }
 0x20c   :  { %v640_v18 = vadd.f32 %v2804_v9, %v607_v17  ;;  %v2072_v19 = vpop.f32.mrb[14].mxu1  ;;  %v665_v21 = vpack.c.bf16 %v655_v12, %v654_v58  ;;  %v1785_v17 = vld [vmem:[#allocation4 + $0x40] sm:$0xff]  }
 0x20d   :  { %v657_v23 = vmax.f32 %v641_v56, 0.0  ;;  %v618_v24 = vadd.f32 %v2797_v62, %v2072_v19  ;;  %v467_v27 = vpop.f32.mrb[15].mxu1  ;;  %v2486_v62 = vld [vmem:[#allocation2 + $0x8] sm:$0xff]   ;;  %v1788_v19 = vld [vmem:[#allocation4 + $0x58] sm:$0xff]  }
 0x20e   :  { %v656_v28 = vmax.f32 %v640_v18, 0.0  ;;  %v615_v63 = vadd.f32 %v2793_v60, %v467_v27  ;;  %2115 = vmatprep.subr.bf16.mxu1 %v665_v21  ;;  %v2487_v60 = vld [vmem:[#allocation2 + $0x10] sm:$0xff]   ;;  %v1786_v56 = vld [vmem:[#allocation4 + $0x48] sm:$0xff]  }
 0x20f   :  { %v643_v61 = vadd.f32 %v2804_v9, %v618_v24  ;;  %2116 = vmatpush3.bf16.msra.mxu1 %v665_v21  ;;  %v1787_v18 = vld [vmem:[#allocation4 + $0x50] sm:$0xff]  }
 0x210   :  { %v642_v30 = vadd.f32 %v2804_v9, %v615_v63  ;;  %v666_v32 = vpack.c.bf16 %v657_v23, %v656_v28  ;;  %v2488_v9 = vld [vmem:[#allocation2 + $0x18] sm:$0xff]   ;;  %v1790_v23 = vld [vmem:[#allocation4 + $0x68] sm:$0xff]   ;;  %v1791_v24 = vld [vmem:[#allocation4 + $0x70] sm:$0xff]  }
 0x211   :  { %v659_v33 = vmax.f32 %v643_v61, 0.0  ;;  %v2885_v28 = vld [vmem:[%s3033_s5] ss:$0 sm:$0xff] }
 0x212   :  { %v658_v34 = vmax.f32 %v642_v30, 0.0  ;;  %2117 = vmatprep.subr.bf16.mxu1 %v666_v32 }
 0x213   :  { %2118 = vmatpush3.bf16.msra.mxu1 %v666_v32 }
 0x214   :  { %v667_v35 = vpack.c.bf16 %v659_v33, %v658_v34 }
 0x216   :  { %2119 = vmatprep.subr.bf16.mxu1 %v667_v35 }
 0x217   :  { %2120 = vmatpush3.bf16.msra.mxu1 %v667_v35 }
 0x218   :  { %2193 = vmatprep.subr.bf16.mxu1 %v2485_v36 }
 0x21a   :  { %2122 = vmatmul.mubr.bf16.vlgmr.msra.gmra.mrb[16].mxu1 %v2701_v14 }
 0x21b   :  { %2194 = vmatpush3.bf16.msra.mxu1 %v2485_v36  ;;  %2125 = vmatprep.mubr.bf16.mxu1 %v2709_v16 }
 0x21c   :  { %2195 = vmatprep.subr.bf16.mxu1 %v2486_v62 }
 0x21f   :  { %2196 = vmatpush3.bf16.msra.mxu1 %v2486_v62 }
 0x220   :  { %2197 = vmatprep.subr.bf16.mxu1 %v2487_v60 }
 0x222   :  { %2126 = vmatmul.mubr.bf16.gmra.mrb[20].mxu1 %v2726_v20 }
 0x223   :  { %2198 = vmatpush3.bf16.msra.mxu1 %v2487_v60  ;;  %2129 = vmatprep.mubr.bf16.mxu1 %v2734_v22 }
 0x224   :  { %2199 = vmatprep.subr.bf16.mxu1 %v2488_v9 }
 0x227   :  { %2200 = vmatpush3.bf16.msra.mxu1 %v2488_v9 }
 0x228   :  { %2201 = vmatprep.subr.bf16.mxu1 %v2489_v37 }
 0x22a   :  { %2130 = vmatmul.mubr.bf16.gmra.mrb[24].mxu1 %v2747_v25 }
 0x22b   :  { %2202 = vmatpush3.bf16.msra.mxu1 %v2489_v37  ;;  %2133 = vmatprep.mubr.bf16.mxu1 %v2752_v26 }
 0x22c   :  { %2203 = vmatprep.subr.bf16.mxu1 %v2490_v38 }
 0x22f   :  { %2204 = vmatpush3.bf16.msra.mxu1 %v2490_v38 }
 0x230   :  { %2205 = vmatprep.subr.bf16.mxu1 %v2491_v39 }
 0x232   :  { %2134 = vmatmul.mubr.bf16.gmra.mrb[28].mxu1 %v2765_v29 }
 0x233   :  { %2206 = vmatpush3.bf16.msra.mxu1 %v2491_v39  ;;  %2209 = vmatprep.mubr.bf16.mxu1 %v2810_v31 }
 0x234   :  { %2207 = vmatprep.subr.bf16.mxu1 %v2492_v41 }
 0x237   :  { %2208 = vmatpush3.bf16.msra.mxu1 %v2492_v41 }
 0x238   :  { %2410 = vmatprep.subr.bf16.mxu1 %v1785_v17 }
 0x23a   :  { %2210 = vmatmul.mubr.bf16.vlgmr.msra.gmra.mrb[32].mxu1 %v2816_v40 }
 0x23b   :  { %2213 = vmatprep.mubr.bf16.mxu1 %v2823_v49  ;;  %2412 = vmatpush3.bf16.msra.mxu1 %v1785_v17 }
 0x23c   :  { %2414 = vmatprep.subr.bf16.mxu1 %v1786_v56 }
 0x23f   :  { %2416 = vmatpush3.bf16.msra.mxu1 %v1786_v56 }
 0x240   :  { %2418 = vmatprep.subr.bf16.mxu1 %v1787_v18 }
 0x242   :  { %2214 = vmatmul.mubr.bf16.gmra.mrb[36].mxu1 %v2831_v2 }
 0x243   :  { %2217 = vmatprep.mubr.bf16.mxu1 %v2839_v11  ;;  %2420 = vmatpush3.bf16.msra.mxu1 %v1787_v18 }
 0x244   :  { %2422 = vmatprep.subr.bf16.mxu1 %v1788_v19 }
 0x247   :  { %2424 = vmatpush3.bf16.msra.mxu1 %v1788_v19 }
 0x24a   :  { %2218 = vmatmul.mubr.bf16.gmra.mrb[40].mxu1 %v665_v21  ;;  %v1789_v21 = vld [vmem:[#allocation4 + $0x60] sm:$0xff]  }
 0x24b   :  { %2221 = vmatprep.mubr.bf16.mxu1 %v666_v32  ;;  %2426 = vmatprep.subr.bf16.mxu1 %v1789_v21 }
 0x24c   :  { %2428 = vmatpush3.bf16.msra.mxu1 %v1789_v21 }
 0x24d   :  { %2430 = vmatprep.subr.bf16.mxu1 %v1790_v23 }
 0x250   :  { %2432 = vmatpush3.bf16.msra.mxu1 %v1790_v23 }
 0x251   :  { %2434 = vmatprep.subr.bf16.mxu1 %v1791_v24 }
 0x252   :  { %2222 = vmatmul.mubr.bf16.gmra.mrb[44].mxu1 %v667_v35 }
 0x254   :  { %2436 = vmatpush3.bf16.msra.mxu1 %v1791_v24 }
 0x2ed   :  { %v2123_v43 = vpop.f32.mrb[16].mxu1 }
 0x2ee   :  { %v702_v44 = vpop.f32.mrb[17].mxu1 }
 0x2ef   :  { %v2124_v45 = vpop.f32.mrb[18].mxu1  ;;  %2169 = vmatprep.mubr.f32.mxu0 %v702_v44 }
 0x2f0   :  { %v705_v31 = vpop.f32.mrb[19].mxu1 }
 0x2f1   :  { %2170 = vmatmul.mubr.f32.vlgmr.msra.gmra.mrb[32].mxu0 %v705_v31 }
 0x2f2   :  { %2172 = vmatprep.mubr.f32.mxu0 %v2123_v43 }
 0x2f5   :  { %v2127_v40 = vpop.f32.mrb[20].mxu1  ;;  %2173 = vmatmul.mubr.f32.gmra.mrb[34].mxu0 %v2124_v45 }
 0x2f6   :  { %v718_v46 = vpop.f32.mrb[21].mxu1 }
 0x2f7   :  { %v2128_v47 = vpop.f32.mrb[22].mxu1  ;;  %2175 = vmatprep.mubr.f32.mxu0 %v718_v46 }
 0x2f8   :  { %v721_v48 = vpop.f32.mrb[23].mxu1 }
 0x2f9   :  { %2176 = vmatmul.mubr.f32.gmra.mrb[36].mxu0 %v721_v48 }
 0x2fa   :  { %2178 = vmatprep.mubr.f32.mxu0 %v2127_v40 }
 0x2fd   :  { %v2131_v49 = vpop.f32.mrb[24].mxu1  ;;  %2179 = vmatmul.mubr.f32.gmra.mrb[38].mxu0 %v2128_v47 }
 0x2fe   :  { %v734_v50 = vpop.f32.mrb[25].mxu1 }
 0x2ff   :  { %v2132_v51 = vpop.f32.mrb[26].mxu1  ;;  %2181 = vmatprep.mubr.f32.mxu0 %v734_v50 }
 0x300   :  { %v737_v53 = vpop.f32.mrb[27].mxu1 }
 0x301   :  { %2182 = vmatmul.mubr.f32.gmra.mrb[40].mxu0 %v737_v53 }
 0x302   :  { %2184 = vmatprep.mubr.f32.mxu0 %v2131_v49 }
 0x305   :  { %v2135_v54 = vpop.f32.mrb[28].mxu1  ;;  %2185 = vmatmul.mubr.f32.gmra.mrb[42].mxu0 %v2132_v51 }
 0x306   :  { %v750_v55 = vpop.f32.mrb[29].mxu1 }
 0x307   :  { %v2136_v52 = vpop.f32.mrb[30].mxu1  ;;  %2187 = vmatprep.mubr.f32.mxu0 %v750_v55 }
 0x308   :  { %v753_v0 = vpop.f32.mrb[31].mxu1 }
 0x309   :  { %2188 = vmatmul.mubr.f32.gmra.mrb[44].mxu0 %v753_v0 }
 0x30a   :  { %2190 = vmatprep.mubr.f32.mxu0 %v2135_v54 }
 0x30d   :  { %2191 = vmatmul.mubr.f32.gmra.mrb[46].mxu0 %v2136_v52  ;;  %v2211_v1 = vpop.f32.mrb[32].mxu1 }
 0x30e   :  { %v1040_v2 = vpop.f32.mrb[33].mxu1  ;;  %2241 = vmatprep.mubr.bf16.mxu0 %v2650_v4 }
 0x30f   :  { %v2212_v3 = vpop.f32.mrb[34].mxu1 }
 0x310   :  { %v1043_v5 = vpop.f32.mrb[35].mxu1 }
 0x315   :  { %v2864_v6 = vpop.f32.mrb[36].mxu1 }
 0x316   :  { %v1056_v59 = vpop.f32.mrb[37].mxu1 }
 0x317   :  { %v2216_v7 = vpop.f32.mrb[38].mxu1 }
 0x318   :  { %v1059_v57 = vpop.f32.mrb[39].mxu1 }
 0x31d   :  { %v2866_v8 = vpop.f32.mrb[40].mxu1 }
 0x31e   :  { %v2868_v10 = vpop.f32.mrb[41].mxu1 }
 0x31f   :  { %v2870_v11 = vpop.f32.mrb[42].mxu1 }
 0x320   :  { %v2872_v12 = vpop.f32.mrb[43].mxu1 }
 0x325   :  { %v2874_v13 = vpop.f32.mrb[44].mxu1 }
 0x326   :  { %v2876_v15 = vpop.f32.mrb[45].mxu1 }
 0x327   :  { %v2878_v4 = vpop.f32.mrb[46].mxu1 }
 0x328   :  { %v2880_v58 = vpop.f32.mrb[47].mxu1 }
 0x3c4   :  { %v2171_v27 = vpop.f32.mrb[32].mxu0 }
 0x3c5   :  { %v1044_v63 = vadd.f32 %v2171_v27, %v1043_v5  ;;  %v879_v61 = vpop.f32.mrb[33].mxu0 }
 0x3c6   :  { %v1041_v30 = vadd.f32 %v1040_v2, %v879_v61 }
 0x3c7   :  { %v1111_v32 = vadd.f32 %v2885_v28, %v1044_v63 }
 0x3c8   :  { %v1110_v33 = vadd.f32 %v2885_v28, %v1041_v30  ;;  %v2174_v34 = vpop.f32.mrb[34].mxu0 }
 0x3c9   :  { %v1127_v35 = vmax.f32 %v1111_v32, 0.0  ;;  %v1052_v36 = vadd.f32 %v2212_v3, %v2174_v34  ;;  %v889_v62 = vpop.f32.mrb[35].mxu0 }
 0x3ca   :  { %v1126_v60 = vmax.f32 %v1110_v33, 0.0  ;;  %v1049_v9 = vadd.f32 %v2211_v1, %v889_v62 }
 0x3cb   :  { %v1113_v37 = vadd.f32 %v2885_v28, %v1052_v36 }
 0x3cc   :  { %v1112_v38 = vadd.f32 %v2885_v28, %v1049_v9  ;;  %v2177_v39 = vpop.f32.mrb[36].mxu0  ;;  %v2891_v41 = vpack.c.bf16 %v1127_v35, %v1126_v60 }
 0x3cd   :  { %v1129_v42 = vmax.f32 %v1113_v37, 0.0  ;;  %v1060_v43 = vadd.f32 %v2177_v39, %v1059_v57  ;;  %v899_v44 = vpop.f32.mrb[37].mxu0 }
 0x3ce   :  { %v1128_v45 = vmax.f32 %v1112_v38, 0.0  ;;  %v1057_v31 = vadd.f32 %v1056_v59, %v899_v44  ;;  %2225 = vmatprep.subr.bf16.mxu0 %v2891_v41  ;;  %v2493_v44 = vld [vmem:[#allocation4] sm:$0xff]  }
 0x3cf   :  { %v1115_v40 = vadd.f32 %v2885_v28, %v1060_v43  ;;  %2226 = vmatpush3.bf16.msra.mxu0 %v2891_v41 }
 0x3d0   :  { %v1114_v46 = vadd.f32 %v2885_v28, %v1057_v31  ;;  %v2180_v47 = vpop.f32.mrb[38].mxu0  ;;  %v2897_v48 = vpack.c.bf16 %v1129_v42, %v1128_v45  ;;  %v2496_v45 = vld [vmem:[#allocation4 + $0x18] sm:$0xff]   ;;  %v2497_v31 = vld [vmem:[#allocation4 + $0x20] sm:$0xff]  }
 0x3d1   :  { %v1131_v49 = vmax.f32 %v1115_v40, 0.0  ;;  %v1068_v50 = vadd.f32 %v2216_v7, %v2180_v47  ;;  %v909_v51 = vpop.f32.mrb[39].mxu0  ;;  %v2498_v40 = vld [vmem:[#allocation4 + $0x28] sm:$0xff]  }
 0x3d2   :  { %v1130_v53 = vmax.f32 %v1114_v46, 0.0  ;;  %v1065_v54 = vadd.f32 %v2864_v6, %v909_v51  ;;  %2227 = vmatprep.subr.bf16.mxu0 %v2897_v48 }
 0x3d3   :  { %v1117_v55 = vadd.f32 %v2885_v28, %v1068_v50  ;;  %2228 = vmatpush3.bf16.msra.mxu0 %v2897_v48 }
 0x3d4   :  { %v1116_v52 = vadd.f32 %v2885_v28, %v1065_v54  ;;  %v2183_v0 = vpop.f32.mrb[40].mxu0  ;;  %v2904_v1 = vpack.c.bf16 %v1131_v49, %v1130_v53 }
 0x3d5   :  { %v1133_v2 = vmax.f32 %v1117_v55, 0.0  ;;  %v1076_v3 = vadd.f32 %v2183_v0, %v2872_v12  ;;  %v919_v5 = vpop.f32.mrb[41].mxu0 }
 0x3d6   :  { %v1132_v59 = vmax.f32 %v1116_v52, 0.0  ;;  %v1073_v7 = vadd.f32 %v2868_v10, %v919_v5  ;;  %2229 = vmatprep.subr.bf16.mxu0 %v2904_v1 }
 0x3d7   :  { %v1119_v6 = vadd.f32 %v2885_v28, %v1076_v3  ;;  %2230 = vmatpush3.bf16.msra.mxu0 %v2904_v1 }
 0x3d8   :  { %v1118_v57 = vadd.f32 %v2885_v28, %v1073_v7  ;;  %v2186_v17 = vpop.f32.mrb[42].mxu0  ;;  %v2912_v56 = vpack.c.bf16 %v1133_v2, %v1132_v59 }
 0x3d9   :  { %v1135_v18 = vmax.f32 %v1119_v6, 0.0  ;;  %v1084_v19 = vadd.f32 %v2870_v11, %v2186_v17  ;;  %v929_v21 = vpop.f32.mrb[43].mxu0 }
 0x3da   :  { %v1134_v12 = vmax.f32 %v1118_v57, 0.0  ;;  %v1081_v23 = vadd.f32 %v2866_v8, %v929_v21  ;;  %2231 = vmatprep.subr.bf16.mxu0 %v2912_v56 }
 0x3db   :  { %v1121_v10 = vadd.f32 %v2885_v28, %v1084_v19  ;;  %2232 = vmatpush3.bf16.msra.mxu0 %v2912_v56 }
 0x3dc   :  { %v1120_v24 = vadd.f32 %v2885_v28, %v1081_v23  ;;  %v2189_v27 = vpop.f32.mrb[44].mxu0  ;;  %v2920_v63 = vpack.c.bf16 %v1135_v18, %v1134_v12 }
 0x3dd   :  { %v1137_v61 = vmax.f32 %v1121_v10, 0.0  ;;  %v1092_v30 = vadd.f32 %v2189_v27, %v2880_v58  ;;  %v939_v32 = vpop.f32.mrb[45].mxu0 }
 0x3de   :  { %v1136_v11 = vmax.f32 %v1120_v24, 0.0  ;;  %v1089_v33 = vadd.f32 %v2876_v15, %v939_v32  ;;  %2233 = vmatprep.subr.bf16.mxu0 %v2920_v63 }
 0x3df   :  { %v1123_v8 = vadd.f32 %v2885_v28, %v1092_v30  ;;  %2234 = vmatpush3.bf16.msra.mxu0 %v2920_v63 }
 0x3e0   :  { %v1122_v34 = vadd.f32 %v2885_v28, %v1089_v33  ;;  %v2192_v35 = vpop.f32.mrb[46].mxu0  ;;  %v2928_v36 = vpack.c.bf16 %v1137_v61, %v1136_v11 }
 0x3e1   :  { %v1139_v62 = vmax.f32 %v1123_v8, 0.0  ;;  %v1100_v60 = vadd.f32 %v2878_v4, %v2192_v35  ;;  %v949_v9 = vpop.f32.mrb[47].mxu0 }
 0x3e2   :  { %v1138_v58 = vmax.f32 %v1122_v34, 0.0  ;;  %v1097_v37 = vadd.f32 %v2874_v13, %v949_v9  ;;  %2235 = vmatprep.subr.bf16.mxu0 %v2928_v36  ;;  %v2494_v13 = vld [vmem:[#allocation4 + $0x8] sm:$0xff]  }
 0x3e3   :  { %v1125_v15 = vadd.f32 %v2885_v28, %v1100_v60  ;;  %2236 = vmatpush3.bf16.msra.mxu0 %v2928_v36 }
 0x3e4   :  { %v1124_v38 = vadd.f32 %v2885_v28, %v1097_v37  ;;  %v2936_v39 = vpack.c.bf16 %v1139_v62, %v1138_v58  ;;  %v2495_v28 = vld [vmem:[#allocation4 + $0x10] sm:$0xff]  }
 0x3e5   :  { %v1141_v42 = vmax.f32 %v1125_v15, 0.0 }
 0x3e6   :  { %v1140_v43 = vmax.f32 %v1124_v38, 0.0  ;;  %2237 = vmatprep.subr.bf16.mxu0 %v2936_v39 }
 0x3e7   :  { %2238 = vmatpush3.bf16.msra.mxu0 %v2936_v39 }
 0x3e8   :  { %v2940_v4 = vpack.c.bf16 %v1141_v42, %v1140_v43 }
 0x3ea   :  { %2239 = vmatprep.subr.bf16.mxu0 %v2940_v4 }
 0x3eb   :  { %2240 = vmatpush3.bf16.msra.mxu0 %v2940_v4 }
 0x3ec   :  { %2313 = vmatprep.subr.bf16.mxu0 %v2493_v44 }
 0x3ee   :  { %2242 = vmatmul.mubr.bf16.vlgmr.msra.gmra.mrb[48].mxu0 %v2701_v14  ;;  %v2499_v14 = vld [vmem:[#allocation4 + $0x30] sm:$0xff]  }
 0x3ef   :  { %2314 = vmatpush3.bf16.msra.mxu0 %v2493_v44  ;;  %2245 = vmatprep.mubr.bf16.mxu0 %v2709_v16  ;;  %v2500_v16 = vld [vmem:[#allocation4 + $0x38] sm:$0xff]  }
 0x3f0   :  { %2315 = vmatprep.subr.bf16.mxu0 %v2494_v13 }
 0x3f3   :  { %2316 = vmatpush3.bf16.msra.mxu0 %v2494_v13 }
 0x3f4   :  { %2317 = vmatprep.subr.bf16.mxu0 %v2495_v28 }
 0x3f6   :  { %2246 = vmatmul.mubr.bf16.gmra.mrb[52].mxu0 %v2726_v20  ;;  %v1792_v20 = vld [vmem:[#allocation4 + $0x78] sm:$0xff]  }
 0x3f7   :  { %2318 = vmatpush3.bf16.msra.mxu0 %v2495_v28  ;;  %2249 = vmatprep.mubr.bf16.mxu0 %v2734_v22 }
 0x3f8   :  { %2319 = vmatprep.subr.bf16.mxu0 %v2496_v45  ;;  %2438 = vmatprep.subr.bf16.mxu1 %v1792_v20 }
 0x3f9   :  { %2440 = vmatpush3.bf16.msra.mxu1 %v1792_v20 }
 0x3fa   :  { %2441 = vmatprep.subr.bf16.mxu1 %v2493_v44 }
 0x3fb   :  { %2320 = vmatpush3.bf16.msra.mxu0 %v2496_v45 }
 0x3fc   :  { %2321 = vmatprep.subr.bf16.mxu0 %v2497_v31 }
 0x3fe   :  { %2250 = vmatmul.mubr.bf16.gmra.mrb[56].mxu0 %v2747_v25 }
 0x3ff   :  { %2322 = vmatpush3.bf16.msra.mxu0 %v2497_v31  ;;  %2253 = vmatprep.mubr.bf16.mxu0 %v2752_v26 }
 0x400   :  { %2323 = vmatprep.subr.bf16.mxu0 %v2498_v40 }
 0x403   :  { %2324 = vmatpush3.bf16.msra.mxu0 %v2498_v40 }
 0x404   :  { %2325 = vmatprep.subr.bf16.mxu0 %v2499_v14 }
 0x406   :  { %2254 = vmatmul.mubr.bf16.gmra.mrb[60].mxu0 %v2765_v29 }
 0x407   :  { %2326 = vmatpush3.bf16.msra.mxu0 %v2499_v14  ;;  %2329 = vmatprep.mubr.bf16.mxu0 %v2891_v41 }
 0x408   :  { %2327 = vmatprep.subr.bf16.mxu0 %v2500_v16 }
 0x40b   :  { %2328 = vmatpush3.bf16.msra.mxu0 %v2500_v16 }
 0x40e   :  { %2330 = vmatmul.mubr.bf16.vlgmr.msra.gmra.mrb[64].mxu0 %v2897_v48 }
 0x40f   :  { %2333 = vmatprep.mubr.bf16.mxu0 %v2904_v1 }
 0x416   :  { %2334 = vmatmul.mubr.bf16.gmra.mrb[68].mxu0 %v2912_v56  ;;  %v2962_v56 = vld [vmem:[%s3035_s7] ss:$0 sm:$0xff] }
 0x4c1   :  { %v2243_v22 = vpop.f32.mrb[48].mxu0 }
 0x4c2   :  { %v1184_v25 = vpop.f32.mrb[49].mxu0 }
 0x4c3   :  { %v2244_v26 = vpop.f32.mrb[50].mxu0  ;;  %2289 = vmatprep.mubr.f32.mxu1 %v1184_v25 }
 0x4c4   :  { %v1187_v29 = vpop.f32.mrb[51].mxu0 }
 0x4c5   :  { %2290 = vmatmul.mubr.f32.vlgmr.msra.gmra.mrb[48].mxu1 %v1187_v29 }
 0x4c6   :  { %2292 = vmatprep.mubr.f32.mxu1 %v2243_v22  ;;  %2449 = vmatpush3.bf16.msra.mxu1 %v2493_v44 }
 0x4c7   :  { %2442 = vmatprep.subr.bf16.mxu1 %v2494_v13 }
 0x4c9   :  { %v2247_v41 = vpop.f32.mrb[52].mxu0  ;;  %2293 = vmatmul.mubr.f32.gmra.mrb[50].mxu1 %v2244_v26 }
 0x4ca   :  { %v1200_v46 = vpop.f32.mrb[53].mxu0  ;;  %2450 = vmatpush3.bf16.msra.mxu1 %v2494_v13 }
 0x4cb   :  { %v2248_v47 = vpop.f32.mrb[54].mxu0  ;;  %2295 = vmatprep.mubr.f32.mxu1 %v1200_v46  ;;  %2443 = vmatprep.subr.bf16.mxu1 %v2495_v28 }
 0x4cc   :  { %v1203_v48 = vpop.f32.mrb[55].mxu0 }
 0x4cd   :  { %2296 = vmatmul.mubr.f32.gmra.mrb[52].mxu1 %v1203_v48 }
 0x4ce   :  { %2298 = vmatprep.mubr.f32.mxu1 %v2247_v41  ;;  %2451 = vmatpush3.bf16.msra.mxu1 %v2495_v28 }
 0x4cf   :  { %2444 = vmatprep.subr.bf16.mxu1 %v2496_v45 }
 0x4d1   :  { %v2251_v49 = vpop.f32.mrb[56].mxu0  ;;  %2299 = vmatmul.mubr.f32.gmra.mrb[54].mxu1 %v2248_v47 }
 0x4d2   :  { %v1216_v50 = vpop.f32.mrb[57].mxu0  ;;  %2452 = vmatpush3.bf16.msra.mxu1 %v2496_v45 }
 0x4d3   :  { %v2252_v51 = vpop.f32.mrb[58].mxu0  ;;  %2301 = vmatprep.mubr.f32.mxu1 %v1216_v50  ;;  %2445 = vmatprep.subr.bf16.mxu1 %v2497_v31 }
 0x4d4   :  { %v1219_v53 = vpop.f32.mrb[59].mxu0 }
 0x4d5   :  { %2302 = vmatmul.mubr.f32.gmra.mrb[56].mxu1 %v1219_v53 }
 0x4d6   :  { %2304 = vmatprep.mubr.f32.mxu1 %v2251_v49  ;;  %2453 = vmatpush3.bf16.msra.mxu1 %v2497_v31 }
 0x4d7   :  { %2446 = vmatprep.subr.bf16.mxu1 %v2498_v40 }
 0x4d9   :  { %v2255_v54 = vpop.f32.mrb[60].mxu0  ;;  %2305 = vmatmul.mubr.f32.gmra.mrb[58].mxu1 %v2252_v51 }
 0x4da   :  { %v1232_v55 = vpop.f32.mrb[61].mxu0  ;;  %2454 = vmatpush3.bf16.msra.mxu1 %v2498_v40 }
 0x4db   :  { %v2256_v52 = vpop.f32.mrb[62].mxu0  ;;  %2307 = vmatprep.mubr.f32.mxu1 %v1232_v55  ;;  %2447 = vmatprep.subr.bf16.mxu1 %v2499_v14 }
 0x4dc   :  { %v1235_v0 = vpop.f32.mrb[63].mxu0 }
 0x4dd   :  { %2308 = vmatmul.mubr.f32.gmra.mrb[60].mxu1 %v1235_v0 }
 0x4de   :  { %2310 = vmatprep.mubr.f32.mxu1 %v2255_v54  ;;  %2455 = vmatpush3.bf16.msra.mxu1 %v2499_v14 }
 0x4df   :  { %2448 = vmatprep.subr.bf16.mxu1 %v2500_v16 }
 0x4e1   :  { %2311 = vmatmul.mubr.f32.gmra.mrb[62].mxu1 %v2256_v52  ;;  %v2331_v1 = vpop.f32.mrb[64].mxu0 }
 0x4e2   :  { %2456 = vmatpush3.bf16.msra.mxu1 %v2500_v16  ;;  %v1522_v2 = vpop.f32.mrb[65].mxu0  ;;  %2337 = vmatprep.mubr.bf16.mxu1 %v2920_v63 }
 0x4e3   :  { %v2332_v3 = vpop.f32.mrb[66].mxu0 }
 0x4e4   :  { %v1525_v5 = vpop.f32.mrb[67].mxu0 }
 0x4e5   :  { %2338 = vmatmul.mubr.bf16.vlgmr.msra.gmra.mrb[64].mxu1 %v2928_v36 }
 0x4e6   :  { %2341 = vmatprep.mubr.bf16.mxu1 %v2936_v39 }
 0x4e9   :  { %v2335_v59 = vpop.f32.mrb[68].mxu0 }
 0x4ea   :  { %v1538_v7 = vpop.f32.mrb[69].mxu0 }
 0x4eb   :  { %v2336_v6 = vpop.f32.mrb[70].mxu0 }
 0x4ec   :  { %v1541_v57 = vpop.f32.mrb[71].mxu0 }
 0x4ed   :  { %2342 = vmatmul.mubr.bf16.gmra.mrb[68].mxu1 %v2940_v4 }
 0x598   :  { %v2291_v17 = vpop.f32.mrb[48].mxu1 }
 0x599   :  { %v1526_v18 = vadd.f32 %v2291_v17, %v1525_v5  ;;  %v1361_v19 = vpop.f32.mrb[49].mxu1 }
 0x59a   :  { %v1523_v21 = vadd.f32 %v1522_v2, %v1361_v19 }
 0x59b   :  { %v1593_v12 = vadd.f32 %v2962_v56, %v1526_v18 }
 0x59c   :  { %v1592_v23 = vadd.f32 %v2962_v56, %v1523_v21  ;;  %v2294_v10 = vpop.f32.mrb[50].mxu1 }
 0x59d   :  { %1609 = vst [vmem:[%s3036_s8 + $0x8] sm:$0xff] %v1593_v12  ;;  %v1534_v24 = vadd.f32 %v2332_v3, %v2294_v10  ;;  %v1371_v27 = vpop.f32.mrb[51].mxu1 }
 0x59e   :  { %1608 = vst [vmem:[%s3036_s8] sm:$0xff] %v1592_v23  ;;  %v1531_v63 = vadd.f32 %v2331_v1, %v1371_v27 }
 0x59f   :  { %v1595_v61 = vadd.f32 %v2962_v56, %v1534_v24 }
 0x5a0   :  { %v1594_v30 = vadd.f32 %v2962_v56, %v1531_v63  ;;  %v2297_v32 = vpop.f32.mrb[52].mxu1 }
 0x5a1   :  { %1611 = vst [vmem:[%s3036_s8 + $0x18] sm:$0xff] %v1595_v61  ;;  %v1542_v11 = vadd.f32 %v2297_v32, %v1541_v57  ;;  %v1381_v33 = vpop.f32.mrb[53].mxu1 }
 0x5a2   :  { %1610 = vst [vmem:[%s3036_s8 + $0x10] sm:$0xff] %v1594_v30  ;;  %v1539_v8 = vadd.f32 %v1538_v7, %v1381_v33 }
 0x5a3   :  { %v1597_v34 = vadd.f32 %v2962_v56, %v1542_v11 }
 0x5a4   :  { %v1596_v35 = vadd.f32 %v2962_v56, %v1539_v8  ;;  %v2300_v36 = vpop.f32.mrb[54].mxu1 }
 0x5a5   :  { %1613 = vst [vmem:[%s3036_s8 + $0x28] sm:$0xff] %v1597_v34  ;;  %v1550_v62 = vadd.f32 %v2336_v6, %v2300_v36  ;;  %v1391_v60 = vpop.f32.mrb[55].mxu1 }
 0x5a6   :  { %1612 = vst [vmem:[%s3036_s8 + $0x20] sm:$0xff] %v1596_v35  ;;  %v1547_v9 = vadd.f32 %v2335_v59, %v1391_v60 }
 0x5a7   :  { %v1599_v58 = vadd.f32 %v2962_v56, %v1550_v62 }
 0x5a8   :  { %v1598_v37 = vadd.f32 %v2962_v56, %v1547_v9  ;;  %v2303_v15 = vpop.f32.mrb[56].mxu1 }
 0x5a9   :  { %1615 = vst [vmem:[%s3036_s8 + $0x38] sm:$0xff] %v1599_v58  ;;  %v1401_v38 = vpop.f32.mrb[57].mxu1 }
 0x5aa   :  { %1614 = vst [vmem:[%s3036_s8 + $0x30] sm:$0xff] %v1598_v37 }
 0x5ac   :  { %v2306_v39 = vpop.f32.mrb[58].mxu1 }
 0x5ad   :  { %v1411_v42 = vpop.f32.mrb[59].mxu1 }
 0x5b0   :  { %v2309_v43 = vpop.f32.mrb[60].mxu1 }
 0x5b1   :  { %v1421_v4 = vpop.f32.mrb[61].mxu1 }
 0x5b4   :  { %v2312_v44 = vpop.f32.mrb[62].mxu1 }
 0x5b5   :  { %v1431_v13 = vpop.f32.mrb[63].mxu1 }
 0x5b8   :  { %v2339_v28 = vpop.f32.mrb[64].mxu1 }
 0x5b9   :  { %v1563_v45 = vadd.f32 %v2339_v28, %v1411_v42  ;;  %v1554_v31 = vpop.f32.mrb[65].mxu1 }
 0x5ba   :  { %v1555_v40 = vadd.f32 %v1554_v31, %v1401_v38  ;;  %v2340_v14 = vpop.f32.mrb[66].mxu1 }
 0x5bb   :  { %v1602_v16 = vadd.f32 %v2962_v56, %v1563_v45  ;;  %v1566_v20 = vadd.f32 %v2340_v14, %v2306_v39  ;;  %v1557_v22 = vpop.f32.mrb[67].mxu1 }
 0x5bc   :  { %v1600_v25 = vadd.f32 %v2962_v56, %v1555_v40  ;;  %v1558_v26 = vadd.f32 %v2303_v15, %v1557_v22 }
 0x5bd   :  { %1618 = vst [vmem:[%s3036_s8 + $0x50] sm:$0xff] %v1602_v16  ;;  %v1603_v29 = vadd.f32 %v2962_v56, %v1566_v20 }
 0x5be   :  { %1616 = vst [vmem:[%s3036_s8 + $0x40] sm:$0xff] %v1600_v25  ;;  %v1601_v41 = vadd.f32 %v2962_v56, %v1558_v26 }
 0x5bf   :  { %1619 = vst [vmem:[%s3036_s8 + $0x58] sm:$0xff] %v1603_v29 }
 0x5c0   :  { %1617 = vst [vmem:[%s3036_s8 + $0x48] sm:$0xff] %v1601_v41  ;;  %v2343_v46 = vpop.f32.mrb[68].mxu1 }
 0x5c1   :  { %v1579_v47 = vadd.f32 %v2343_v46, %v1431_v13  ;;  %v1570_v48 = vpop.f32.mrb[69].mxu1 }
 0x5c2   :  { %v1571_v49 = vadd.f32 %v1570_v48, %v1421_v4  ;;  %v2344_v50 = vpop.f32.mrb[70].mxu1 }
 0x5c3   :  { %v1606_v51 = vadd.f32 %v2962_v56, %v1579_v47  ;;  %v1582_v53 = vadd.f32 %v2344_v50, %v2312_v44  ;;  %v1573_v54 = vpop.f32.mrb[71].mxu1 }
 0x5c4   :  { %v1604_v55 = vadd.f32 %v2962_v56, %v1571_v49  ;;  %v1574_v52 = vadd.f32 %v2309_v43, %v1573_v54 }
 0x5c5   :  { %1622 = vst [vmem:[%s3036_s8 + $0x70] sm:$0xff] %v1606_v51  ;;  %v1607_v0 = vadd.f32 %v2962_v56, %v1582_v53 }
 0x5c6   :  { %1620 = vst [vmem:[%s3036_s8 + $0x60] sm:$0xff] %v1604_v55  ;;  %v1605_v1 = vadd.f32 %v2962_v56, %v1574_v52 }
 0x5c7   :  { %1623 = vst [vmem:[%s3036_s8 + $0x78] sm:$0xff] %v1607_v0 }
 0x5c8   :  { %1621 = vst [vmem:[%s3036_s8 + $0x68] sm:$0xff] %v1605_v1 }
 0x5c9   :  { %1628 = vsyncpa [#allocation3], 1 }
 0x5ca   :  { %1629 = vsyncpa [#allocation5], 1 }

</bundles_post_ra>
